<compile_context>
chip_gen: v7x
topology: tpu7x:2x2x1
jax: 0.10.0
libtpu: 0.0.40
codegen_flags: <defaults>
</compile_context>

<pallas_src>
import functools
import math

import jax
import jax.numpy as jnp
from jax import lax
from jax.experimental import pallas as pl
from jax.experimental.pallas import tpu as pltpu


# ---------------------------------------------------------------------------
# Per-generation defaults (scoped VMEM limit, matmul tiles)
# ---------------------------------------------------------------------------

@functools.lru_cache(maxsize=1)
def _device_defaults():
    kind = ""
    try:
        kind = jax.devices()[0].device_kind.lower()
    except Exception:
        pass
    if "v5 lite" in kind or "v5e" in kind or "v5lite" in kind:
        # 128 MiB physical VMEM; 4x128^2 MXU -> 128-aligned K tiles.
        return {"vmem": 96 * 1024 * 1024, "tm": 512, "tn": 512, "tk": 128}
    if "v6" in kind:
        # 128 MiB physical VMEM; 2x256^2 MXU -> bigger 256-aligned tiles.
        return {"vmem": 96 * 1024 * 1024, "tm": 1024, "tn": 1024, "tk": 256}
    if "v7" in kind:
        # 64 MiB physical VMEM per TensorCore -> tighter budget.
        return {"vmem": 48 * 1024 * 1024, "tm": 512, "tn": 512, "tk": 256}
    # Unknown generation: keep the compiler's default scoped-VMEM limit.
    return {"vmem": None, "tm": 512, "tn": 512, "tk": 256}


# ---------------------------------------------------------------------------
# Kernel 1: tiled, pipelined matmul (used for all projections)
# ---------------------------------------------------------------------------

def _pick_tile(size, target):
    """Largest 128-aligned divisor of `size` <= target, else full size."""
    if size <= target:
        return size
    t = (target // 128) * 128
    while t >= 128:
        if size % t == 0:
            return t
        t -= 128
    return size


def _matmul_kernel(x_ref, w_ref, o_ref, acc_ref, *, precision):
    @pl.when(pl.program_id(2) == 0)
    def _():
        acc_ref[...] = jnp.zeros_like(acc_ref)

    acc_ref[...] += jnp.dot(x_ref[...], w_ref[...],
                            preferred_element_type=jnp.float32,
                            precision=precision)

    @pl.when(pl.program_id(2) == pl.num_programs(2) - 1)
    def _():
        o_ref[...] = acc_ref[...].astype(o_ref.dtype)


def pallas_matmul(x, w, *, out_dtype=jnp.float32, precision=None,
                  tm=None, tn=None, tk=None):
    """x: (M, K), w: (K, N) -> (M, N).  Tiled 3-D grid, f32 VMEM accumulator."""
    dd = _device_defaults()
    tm = tm if tm is not None else dd["tm"]
    tn = tn if tn is not None else dd["tn"]
    tk = tk if tk is not None else dd["tk"]
    M, K = x.shape
    K2, N = w.shape
    assert K == K2, (x.shape, w.shape)
    tm = _pick_tile(M, tm)
    tn = _pick_tile(N, tn)
    tk = _pick_tile(K, tk)
    assert M % tm == 0 and N % tn == 0 and K % tk == 0

    kernel = functools.partial(_matmul_kernel, precision=precision)
    return pl.pallas_call(
        kernel,
        grid=(M // tm, N // tn, K // tk),
        in_specs=[
            pl.BlockSpec((tm, tk), lambda i, j, k: (i, k)),
            pl.BlockSpec((tk, tn), lambda i, j, k: (k, j)),
        ],
        out_specs=pl.BlockSpec((tm, tn), lambda i, j, k: (i, j)),
        out_shape=jax.ShapeDtypeStruct((M, N), out_dtype),
        scratch_shapes=[pltpu.VMEM((tm, tn), jnp.float32)],
        compiler_params=pltpu.CompilerParams(
            dimension_semantics=("parallel", "parallel", "arbitrary"),
            vmem_limit_bytes=dd["vmem"]),
    )(x, w)


# ---------------------------------------------------------------------------
# Kernel 2: fused SwitchHead flash core
#   grid = (B, Tq_tiles, H, Tk_tiles); head-major blocks; online softmax;
#   per-head V expert mix; per-head gated W_o projection accumulated over H.
# ---------------------------------------------------------------------------

def _pick_seq_tile(size, target):
    """Largest multiple-of-8 divisor of `size` <= target, else full size."""
    if size <= target:
        return size
    t = (target // 8) * 8
    while t >= 8:
        if size % t == 0:
            return t
        t -= 8
    return size


def _switchhead_flash_kernel(q_ref, k_ref, v_ref, ss_ref, sd_ref, wo_ref,
                             o_ref, m_scr, l_scr, acc_scr, out_scr,
                             *, num_experts, dim_head):
    E, Dh = num_experts, dim_head
    h = pl.program_id(2)
    kv = pl.program_id(3)
    last_h = pl.num_programs(2) - 1
    last_kv = pl.num_programs(3) - 1

    # Output accumulator: init once per (batch, q-tile) block.
    @pl.when(jnp.logical_and(h == 0, kv == 0))
    def _():
        out_scr[...] = jnp.zeros_like(out_scr)

    # Online-softmax state: re-init at the first KV tile of every head.
    @pl.when(kv == 0)
    def _():
        m_scr[...] = jnp.full_like(m_scr, -1e30)
        l_scr[...] = jnp.zeros_like(l_scr)
        acc_scr[...] = jnp.zeros_like(acc_scr)

    q = q_ref[0, 0]        # (tq, Dh)    bf16, already scaled (scale folded in Wq)
    k = k_ref[0, 0]        # (tk, Dh)    bf16
    ve = v_ref[0, 0]       # (tk, E*Dh)  bf16  per-expert values
    ss = ss_ref[0, 0]      # (tk, E)     f32   soft top-k gates (value mixing)

    # Expert mix of V for this head / KV tile (VPU) -- before attention, so
    # the attention matmuls only ever touch a (tk, Dh) value block.
    vm = jnp.zeros((ve.shape[0], Dh), jnp.float32)
    for e in range(E):
        vm = vm + ss[:, e:e + 1] * ve[:, e * Dh:(e + 1) * Dh].astype(jnp.float32)

    # Scores: contract last dims of q and k (no explicit K transpose).
    s = lax.dot_general(q, k, (((1,), (1,)), ((), ())),
                        preferred_element_type=jnp.float32)          # (tq, tk)

    # Online softmax update (f32).
    m_prev = m_scr[...]
    m_new = jnp.maximum(m_prev, jnp.max(s, axis=-1, keepdims=True))
    alpha = jnp.exp(m_prev - m_new)
    p = jnp.exp(s - m_new)
    l_scr[...] = alpha * l_scr[...] + jnp.sum(p, axis=-1, keepdims=True)
    acc_scr[...] = alpha * acc_scr[...] + jnp.dot(
        p.astype(jnp.bfloat16), vm.astype(jnp.bfloat16),
        preferred_element_type=jnp.float32)
    m_scr[...] = m_new

    # Head epilogue: normalize, gate with sd, project through this head's
    # Wo row-block and accumulate over heads (no cross-head concatenate).
    @pl.when(kv == last_kv)
    def _():
        ah = acc_scr[...] * pl.reciprocal(l_scr[...], approx=True)   # (tq, Dh)
        sd = sd_ref[0, 0]                                            # (tq, E)
        gated = jnp.concatenate(
            [sd[:, e:e + 1] * ah for e in range(E)],
            axis=1).astype(jnp.bfloat16)                             # (tq, E*Dh)
        out_scr[...] += jnp.dot(gated, wo_ref[...],
                                preferred_element_type=jnp.float32)

    @pl.when(jnp.logical_and(kv == last_kv, h == last_h))
    def _():
        o_ref[0] = out_scr[...].astype(o_ref.dtype)


def pallas_switchhead_flash(q, k, v, ss, sd, wo_flat, *, num_experts,
                            dim_head, out_dtype=jnp.float32,
                            tq=None, tk=None):
    """q/k: (B,H,T,Dh) bf16; v: (B,H,T,E*Dh) bf16; ss/sd: (B,H,T,E) f32;
    wo_flat: (H*E*Dh, dim) bf16 (rows ordered (h,e,d))  ->  (B, T, dim)."""
    B, H, T, Dh = q.shape
    E = num_experts
    assert Dh == dim_head
    D = wo_flat.shape[-1]
    dd = _device_defaults()
    tq = tq if tq is not None else _pick_seq_tile(T, 256)
    tk = tk if tk is not None else _pick_seq_tile(T, 512)
    assert T % tq == 0 and T % tk == 0

    kernel = functools.partial(_switchhead_flash_kernel,
                               num_experts=E, dim_head=Dh)
    return pl.pallas_call(
        kernel,
        grid=(B, T // tq, H, T // tk),
        in_specs=[
            pl.BlockSpec((1, 1, tq, Dh), lambda b, qi, h, ki: (b, h, qi, 0)),
            pl.BlockSpec((1, 1, tk, Dh), lambda b, qi, h, ki: (b, h, ki, 0)),
            pl.BlockSpec((1, 1, tk, E * Dh), lambda b, qi, h, ki: (b, h, ki, 0)),
            pl.BlockSpec((1, 1, tk, E), lambda b, qi, h, ki: (b, h, ki, 0)),
            pl.BlockSpec((1, 1, tq, E), lambda b, qi, h, ki: (b, h, qi, 0)),
            pl.BlockSpec((E * Dh, D), lambda b, qi, h, ki: (h, 0)),
        ],
        out_specs=pl.BlockSpec((1, tq, D), lambda b, qi, h, ki: (b, qi, 0)),
        out_shape=jax.ShapeDtypeStruct((B, T, D), out_dtype),
        scratch_shapes=[
            pltpu.VMEM((tq, 1), jnp.float32),    # running max m
            pltpu.VMEM((tq, 1), jnp.float32),    # running denom l
            pltpu.VMEM((tq, Dh), jnp.float32),   # per-head attention acc
            pltpu.VMEM((tq, D), jnp.float32),    # cross-head output acc
        ],
        compiler_params=pltpu.CompilerParams(
            dimension_semantics=("parallel", "parallel",
                                 "arbitrary", "arbitrary"),
            vmem_limit_bytes=dd["vmem"]),
    )(q, k, v, ss, sd, wo_flat)


# ---------------------------------------------------------------------------
# Glue (plain JAX): parameter init, top-k masking, forward wrapper
# ---------------------------------------------------------------------------

def topk_mask(scores, k):
    """Binary mask with 1s at the top-k positions along the last dim."""
    _, idx = lax.top_k(scores, k)
    return jnp.sum(jax.nn.one_hot(idx, scores.shape[-1], dtype=scores.dtype),
                   axis=-2)


def init_params(key, dim, num_heads, dim_head, num_experts):
    H, Dh, E = num_heads, dim_head, num_experts
    scale = dim_head ** (-0.5)
    keys = jax.random.split(key, 6)

    def lin(k, fan_in, shape):
        bound = 1.0 / math.sqrt(fan_in)
        return jax.random.uniform(k, shape, jnp.float32, -bound, bound)

    Wq = lin(keys[0], dim, (dim, H * Dh))
    Wk = lin(keys[1], dim, (dim, H * Dh))
    Wv = lin(keys[2], dim, (dim, H * E * Dh))
    Ws = lin(keys[3], dim, (dim, H * E))
    Wd = lin(keys[4], dim, (dim, H * E))
    # nn.Conv2d(H, H*dim*E, (1, Dh), groups=H) weight viewed as (H, E, dim, Dh).
    Wo = lin(keys[5], dim_head, (H, E, dim, Dh))

    Wq_scaled = Wq * scale                      # fold attention scale into Wq
    return {
        # f32 originals (reference + gate path)
        "Wq": Wq, "Wk": Wk, "Wv": Wv, "Ws": Ws, "Wd": Wd, "Wo": Wo,
        # kernel-facing layouts
        "Wqkv_b": jnp.concatenate([Wq_scaled, Wk, Wv], axis=1)
                    .astype(jnp.bfloat16),
        "Wq_b": Wq_scaled.astype(jnp.bfloat16),                  # context path
        "Wkv_b": jnp.concatenate([Wk, Wv], axis=1).astype(jnp.bfloat16),
        "Wg": jnp.concatenate([Ws, Wd], axis=1),                 # f32 gates
        # (H, E, dim, Dh) -> (H*E*Dh, dim): rows ordered (h, e, d_head)
        "Wo_flat_b": Wo.transpose(0, 1, 3, 2).reshape(H * E * Dh, dim)
                       .astype(jnp.bfloat16),
    }


def switchhead_attention(x, params, *, num_heads, dim_head, num_experts,
                         sel_experts, context=None, out_dtype=jnp.float32):
    B, T, dim = x.shape
    H, Dh, E = num_heads, dim_head, num_experts
    x2 = x.reshape(B * T, dim)

    # --- gate projections: f32 + HIGHEST so the discrete top-k is exact ----
    gates = pallas_matmul(x2, params["Wg"], precision=lax.Precision.HIGHEST)
    ss = jax.nn.sigmoid(gates[:, :H * E]).reshape(B, T, H, E)
    ss = ss * topk_mask(ss, sel_experts)                          # soft gates
    sd = jax.nn.sigmoid(gates[:, H * E:]).reshape(B, T, H, E)
    sd = topk_mask(sd, sel_experts)                               # hard gates

    # --- fused q/k/v projection (bf16 in, f32 accumulate, bf16 out) --------
    xb = x2.astype(jnp.bfloat16)
    if context is None:
        qkv = pallas_matmul(xb, params["Wqkv_b"], out_dtype=jnp.bfloat16)
        q2 = qkv[:, :H * Dh]
        k2 = qkv[:, H * Dh:2 * H * Dh]
        v2 = qkv[:, 2 * H * Dh:]
    else:
        assert context.shape == x.shape, "module semantics require same length"
        cb = context.reshape(B * T, dim).astype(jnp.bfloat16)
        q2 = pallas_matmul(xb, params["Wq_b"], out_dtype=jnp.bfloat16)
        kv = pallas_matmul(cb, params["Wkv_b"], out_dtype=jnp.bfloat16)
        k2 = kv[:, :H * Dh]
        v2 = kv[:, H * Dh:]

    # --- head-major layouts for the flash core ------------------------------
    q = q2.reshape(B, T, H, Dh).transpose(0, 2, 1, 3)             # (B,H,T,Dh)
    k = k2.reshape(B, T, H, Dh).transpose(0, 2, 1, 3)             # (B,H,T,Dh)
    v = v2.reshape(B, T, H, E * Dh).transpose(0, 2, 1, 3)         # (B,H,T,E*Dh)
    ssT = ss.transpose(0, 2, 1, 3)                                # (B,H,T,E)
    sdT = sd.transpose(0, 2, 1, 3)                                # (B,H,T,E)

    return pallas_switchhead_flash(
        q, k, v, ssT, sdT, params["Wo_flat_b"],
        num_experts=E, dim_head=Dh, out_dtype=out_dtype)          # (B, T, dim)


# ---------------------------------------------------------------------------
# Pure-JAX f32 reference (mirrors the PyTorch forward) for verification
# ---------------------------------------------------------------------------

def reference_forward(x, params, *, num_heads, dim_head, num_experts,
                      sel_experts):
    B, T, dim = x.shape
    H, Dh, E = num_heads, dim_head, num_experts
    scale = dim_head ** (-0.5)
    hp = lax.Precision.HIGHEST
    x2 = x.reshape(B * T, dim)

    ss = jax.nn.sigmoid(jnp.matmul(x2, params["Ws"], precision=hp)
                        .reshape(B, T, H, E))
    ss = ss * topk_mask(ss, sel_experts)
    sd = jax.nn.sigmoid(jnp.matmul(x2, params["Wd"], precision=hp)
                        .reshape(B, T, H, E))
    sd = topk_mask(sd, sel_experts)

    q = jnp.matmul(x2, params["Wq"], precision=hp).reshape(B, T, H, Dh) \
           .transpose(0, 2, 1, 3)
    k = jnp.matmul(x2, params["Wk"], precision=hp).reshape(B, T, H, Dh) \
           .transpose(0, 2, 1, 3)
    v_all = jnp.matmul(x2, params["Wv"], precision=hp).reshape(B, T, H, E, Dh)

    v = jnp.einsum("bthe,bthed->bhtd", ss, v_all, precision=hp)
    scores = jnp.einsum("bhid,bhjd->bhij", q * scale, k, precision=hp)
    probs = jax.nn.softmax(scores, axis=-1)
    o = jnp.einsum("bhij,bhjd->bhid", probs, v, precision=hp)

    wo = params["Wo"]                                     # (H, E, dim, Dh)
    wo_out = jnp.einsum("bhtk,hedk->bthed", o, wo, precision=hp)
    out = jnp.einsum("bthe,bthed->bthd", sd, wo_out, precision=hp)
    return out.sum(axis=-2)


# ---------------------------------------------------------------------------

if __name__ == "__main__":
    B, T, DIM = 2, 8, 32
    NUM_HEADS, DIM_HEAD = 2, 16
    NUM_EXPERTS, SEL_EXPERTS = 4, 2

    key = jax.random.PRNGKey(0)
    kx, kp = jax.random.split(key)
    x = jax.random.normal(kx, (B, T, DIM), dtype=jnp.float32)
    params = init_params(kp, DIM, NUM_HEADS, DIM_HEAD, NUM_EXPERTS)

    fwd = jax.jit(functools.partial(
        switchhead_attention, num_heads=NUM_HEADS, dim_head=DIM_HEAD,
        num_experts=NUM_EXPERTS, sel_experts=SEL_EXPERTS))
    out = jax.block_until_ready(fwd(x, params))

    ref = jax.block_until_ready(reference_forward(
        x, params, num_heads=NUM_HEADS, dim_head=DIM_HEAD,
        num_experts=NUM_EXPERTS, sel_experts=SEL_EXPERTS))

    assert out.shape == (B, T, DIM), out.shape
    assert bool(jnp.all(jnp.isfinite(out)))
    # bf16 MXU operands with f32 accumulation vs a pure-f32 reference.
    max_err = float(jnp.max(jnp.abs(out - ref)))
    assert jnp.allclose(out, ref, rtol=5e-2, atol=5e-2), max_err

    print("KERNEL_OK")
</pallas_src>

<mosaic_0001>
module attributes {stable_mosaic.version = 11 : i64} {
  func.func @_matmul_kernel(%arg0: i32, %arg1: i32, %arg2: i32, %arg3: memref<16x32xbf16, #tpu.memory_space<vmem>>, %arg4: memref<32x192xbf16, #tpu.memory_space<vmem>>, %arg5: memref<16x192xbf16, #tpu.memory_space<vmem>>, %arg6: memref<16x192xf32, #tpu.memory_space<vmem>>) attributes {dimension_semantics = [#tpu.dimension_semantics<parallel>, #tpu.dimension_semantics<parallel>, #tpu.dimension_semantics<arbitrary>], iteration_bounds = array<i64: 1, 1, 1>, scalar_prefetch = 0 : i64, scratch_operands = 1 : i64, tpu.core_type = #tpu.core_type<tc>, window_params = [{transform_indices = @transform_0, window_bounds = array<i64: 16, 32>}, {transform_indices = @transform_1, window_bounds = array<i64: 32, 192>}, {transform_indices = @transform_2, window_bounds = array<i64: 16, 192>}]} {
    %c0_i32 = arith.constant 0 : i32
    %0 = arith.cmpi eq, %arg2, %c0_i32 : i32
    %1 = arith.extui %0 : i1 to i32
    %c0_i32_0 = arith.constant 0 : i32
    %2 = arith.cmpi ne, %1, %c0_i32_0 : i32
    scf.if %2 {
      %cst_10 = arith.constant 0.000000e+00 : f32
      %12 = vector.broadcast %cst_10 : f32 to vector<16x192xf32>
      %c0_11 = arith.constant 0 : index
      %c0_12 = arith.constant 0 : index
      %13 = vector.load %arg6[%c0_11, %c0_12] : memref<16x192xf32, #tpu.memory_space<vmem>>, vector<16x192xf32>
      tpu.vector_store %arg6[%c0_11, %c0_12], %12 {strides = array<i32>} : memref<16x192xf32, #tpu.memory_space<vmem>>, vector<16x192xf32>,
    } else {
    }
    %c0 = arith.constant 0 : index
    %c0_1 = arith.constant 0 : index
    %3 = vector.load %arg6[%c0, %c0_1] : memref<16x192xf32, #tpu.memory_space<vmem>>, vector<16x192xf32>
    %c0_2 = arith.constant 0 : index
    %c0_3 = arith.constant 0 : index
    %4 = vector.load %arg3[%c0_2, %c0_3] : memref<16x32xbf16, #tpu.memory_space<vmem>>, vector<16x32xbf16>
    %c0_4 = arith.constant 0 : index
    %c0_5 = arith.constant 0 : index
    %5 = vector.load %arg4[%c0_4, %c0_5] : memref<32x192xbf16, #tpu.memory_space<vmem>>, vector<32x192xbf16>
    %cst = arith.constant dense<0.000000e+00> : vector<16x192xf32>
    %6 = tpu.matmul %4, %5, %cst {dimension_numbers = #tpu.dot_dimension_numbers<[1], [0], [0], [1], [0, 0, 1, 1], [], []>} : vector<16x32xbf16>, vector<32x192xbf16>, vector<16x192xf32> -> vector<16x192xf32>
    %7 = arith.addf %3, %6 : vector<16x192xf32>
    %c0_6 = arith.constant 0 : index
    %c0_7 = arith.constant 0 : index
    %8 = vector.load %arg6[%c0_6, %c0_7] : memref<16x192xf32, #tpu.memory_space<vmem>>, vector<16x192xf32>
    tpu.vector_store %arg6[%c0_6, %c0_7], %7 {strides = array<i32>} : memref<16x192xf32, #tpu.memory_space<vmem>>, vector<16x192xf32>,
    %c0_i32_8 = arith.constant 0 : i32
    %9 = arith.cmpi eq, %arg2, %c0_i32_8 : i32
    %10 = arith.extui %9 : i1 to i32
    %c0_i32_9 = arith.constant 0 : i32
    %11 = arith.cmpi ne, %10, %c0_i32_9 : i32
    scf.if %11 {
      %c0_10 = arith.constant 0 : index
      %c0_11 = arith.constant 0 : index
      %12 = vector.load %arg6[%c0_10, %c0_11] : memref<16x192xf32, #tpu.memory_space<vmem>>, vector<16x192xf32>
      %13 = arith.truncf %12 : vector<16x192xf32> to vector<16x192xbf16>
      %c0_12 = arith.constant 0 : index
      %c0_13 = arith.constant 0 : index
      %14 = vector.load %arg5[%c0_12, %c0_13] : memref<16x192xbf16, #tpu.memory_space<vmem>>, vector<16x192xbf16>
      tpu.vector_store %arg5[%c0_12, %c0_13], %13 {strides = array<i32>} : memref<16x192xbf16, #tpu.memory_space<vmem>>, vector<16x192xbf16>,
    } else {
    }
    return
  }
  func.func @transform_0(%arg0: i32, %arg1: i32, %arg2: i32) -> (i32, i32) {
    %c0_i32 = arith.constant 0 : i32
    return %arg0, %arg2 : i32, i32
  }
  func.func @transform_1(%arg0: i32, %arg1: i32, %arg2: i32) -> (i32, i32) {
    %c0_i32 = arith.constant 0 : i32
    return %arg2, %arg1 : i32, i32
  }
  func.func @transform_2(%arg0: i32, %arg1: i32, %arg2: i32) -> (i32, i32) {
    %c0_i32 = arith.constant 0 : i32
    return %arg0, %arg1 : i32, i32
  }
}

module attributes {stable_mosaic.version = 11 : i64} {
  func.func @_matmul_kernel(%arg0: i32, %arg1: i32, %arg2: i32, %arg3: memref<16x32xf32, #tpu.memory_space<vmem>>, %arg4: memref<32x16xf32, #tpu.memory_space<vmem>>, %arg5: memref<16x16xf32, #tpu.memory_space<vmem>>, %arg6: memref<16x16xf32, #tpu.memory_space<vmem>>) attributes {dimension_semantics = [#tpu.dimension_semantics<parallel>, #tpu.dimension_semantics<parallel>, #tpu.dimension_semantics<arbitrary>], iteration_bounds = array<i64: 1, 1, 1>, scalar_prefetch = 0 : i64, scratch_operands = 1 : i64, tpu.core_type = #tpu.core_type<tc>, window_params = [{transform_indices = @transform_0, window_bounds = array<i64: 16, 32>}, {transform_indices = @transform_1, window_bounds = array<i64: 32, 16>}, {transform_indices = @transform_2, window_bounds = array<i64: 16, 16>}]} {
    %c0_i32 = arith.constant 0 : i32
    %0 = arith.cmpi eq, %arg2, %c0_i32 : i32
    %1 = arith.extui %0 : i1 to i32
    %c0_i32_0 = arith.constant 0 : i32
    %2 = arith.cmpi ne, %1, %c0_i32_0 : i32
    scf.if %2 {
      %cst_10 = arith.constant 0.000000e+00 : f32
      %12 = vector.broadcast %cst_10 : f32 to vector<16x16xf32>
      %c0_11 = arith.constant 0 : index
      %c0_12 = arith.constant 0 : index
      %13 = vector.load %arg6[%c0_11, %c0_12] : memref<16x16xf32, #tpu.memory_space<vmem>>, vector<16x16xf32>
      tpu.vector_store %arg6[%c0_11, %c0_12], %12 {strides = array<i32>} : memref<16x16xf32, #tpu.memory_space<vmem>>, vector<16x16xf32>,
    } else {
    }
    %c0 = arith.constant 0 : index
    %c0_1 = arith.constant 0 : index
    %3 = vector.load %arg6[%c0, %c0_1] : memref<16x16xf32, #tpu.memory_space<vmem>>, vector<16x16xf32>
    %c0_2 = arith.constant 0 : index
    %c0_3 = arith.constant 0 : index
    %4 = vector.load %arg3[%c0_2, %c0_3] : memref<16x32xf32, #tpu.memory_space<vmem>>, vector<16x32xf32>
    %c0_4 = arith.constant 0 : index
    %c0_5 = arith.constant 0 : index
    %5 = vector.load %arg4[%c0_4, %c0_5] : memref<32x16xf32, #tpu.memory_space<vmem>>, vector<32x16xf32>
    %cst = arith.constant dense<0.000000e+00> : vector<16x16xf32>
    %6 = tpu.matmul %4, %5, %cst {dimension_numbers = #tpu.dot_dimension_numbers<[1], [0], [0], [1], [0, 0, 1, 1], [], []>, precision = #tpu.contract_precision<fp32>} : vector<16x32xf32>, vector<32x16xf32>, vector<16x16xf32> -> vector<16x16xf32>
    %7 = arith.addf %3, %6 : vector<16x16xf32>
    %c0_6 = arith.constant 0 : index
    %c0_7 = arith.constant 0 : index
    %8 = vector.load %arg6[%c0_6, %c0_7] : memref<16x16xf32, #tpu.memory_space<vmem>>, vector<16x16xf32>
    tpu.vector_store %arg6[%c0_6, %c0_7], %7 {strides = array<i32>} : memref<16x16xf32, #tpu.memory_space<vmem>>, vector<16x16xf32>,
    %c0_i32_8 = arith.constant 0 : i32
    %9 = arith.cmpi eq, %arg2, %c0_i32_8 : i32
    %10 = arith.extui %9 : i1 to i32
    %c0_i32_9 = arith.constant 0 : i32
    %11 = arith.cmpi ne, %10, %c0_i32_9 : i32
    scf.if %11 {
      %c0_10 = arith.constant 0 : index
      %c0_11 = arith.constant 0 : index
      %12 = vector.load %arg6[%c0_10, %c0_11] : memref<16x16xf32, #tpu.memory_space<vmem>>, vector<16x16xf32>
      %c0_12 = arith.constant 0 : index
      %c0_13 = arith.constant 0 : index
      %13 = vector.load %arg5[%c0_12, %c0_13] : memref<16x16xf32, #tpu.memory_space<vmem>>, vector<16x16xf32>
      tpu.vector_store %arg5[%c0_12, %c0_13], %12 {strides = array<i32>} : memref<16x16xf32, #tpu.memory_space<vmem>>, vector<16x16xf32>,
    } else {
    }
    return
  }
  func.func @transform_0(%arg0: i32, %arg1: i32, %arg2: i32) -> (i32, i32) {
    %c0_i32 = arith.constant 0 : i32
    return %arg0, %arg2 : i32, i32
  }
  func.func @transform_1(%arg0: i32, %arg1: i32, %arg2: i32) -> (i32, i32) {
    %c0_i32 = arith.constant 0 : i32
    return %arg2, %arg1 : i32, i32
  }
  func.func @transform_2(%arg0: i32, %arg1: i32, %arg2: i32) -> (i32, i32) {
    %c0_i32 = arith.constant 0 : i32
    return %arg0, %arg1 : i32, i32
  }
}

module attributes {stable_mosaic.version = 11 : i64} {
  func.func @_switchhead_flash_kernel(%arg0: i32, %arg1: i32, %arg2: i32, %arg3: i32, %arg4: memref<1x1x8x16xbf16, #tpu.memory_space<vmem>>, %arg5: memref<1x1x8x16xbf16, #tpu.memory_space<vmem>>, %arg6: memref<1x1x8x64xbf16, #tpu.memory_space<vmem>>, %arg7: memref<1x1x8x4xf32, #tpu.memory_space<vmem>>, %arg8: memref<1x1x8x4xf32, #tpu.memory_space<vmem>>, %arg9: memref<64x32xbf16, #tpu.memory_space<vmem>>, %arg10: memref<1x8x32xf32, #tpu.memory_space<vmem>>, %arg11: memref<8x1xf32, #tpu.memory_space<vmem>>, %arg12: memref<8x1xf32, #tpu.memory_space<vmem>>, %arg13: memref<8x16xf32, #tpu.memory_space<vmem>>, %arg14: memref<8x32xf32, #tpu.memory_space<vmem>>) attributes {dimension_semantics = [#tpu.dimension_semantics<parallel>, #tpu.dimension_semantics<parallel>, #tpu.dimension_semantics<arbitrary>, #tpu.dimension_semantics<arbitrary>], iteration_bounds = array<i64: 2, 1, 2, 1>, scalar_prefetch = 0 : i64, scratch_operands = 4 : i64, tpu.core_type = #tpu.core_type<tc>, window_params = [{transform_indices = @transform_0, window_bounds = array<i64: 1, 1, 8, 16>}, {transform_indices = @transform_1, window_bounds = array<i64: 1, 1, 8, 16>}, {transform_indices = @transform_2, window_bounds = array<i64: 1, 1, 8, 64>}, {transform_indices = @transform_3, window_bounds = array<i64: 1, 1, 8, 4>}, {transform_indices = @transform_4, window_bounds = array<i64: 1, 1, 8, 4>}, {transform_indices = @transform_5, window_bounds = array<i64: 64, 32>}, {transform_indices = @transform_6, window_bounds = array<i64: 1, 8, 32>}]} {
    %c0_i32 = arith.constant 0 : i32
    %0 = arith.cmpi eq, %arg2, %c0_i32 : i32
    %c0_i32_0 = arith.constant 0 : i32
    %1 = arith.cmpi eq, %arg3, %c0_i32_0 : i32
    %2 = arith.andi %0, %1 : i1
    %3 = arith.extui %2 : i1 to i32
    %c0_i32_1 = arith.constant 0 : i32
    %4 = arith.cmpi ne, %3, %c0_i32_1 : i32
    scf.if %4 {
      %cst_39 = arith.constant 0.000000e+00 : f32
      %74 = vector.broadcast %cst_39 : f32 to vector<8x32xf32>
      %c0_40 = arith.constant 0 : index
      %c0_41 = arith.constant 0 : index
      %75 = vector.load %arg14[%c0_40, %c0_41] : memref<8x32xf32, #tpu.memory_space<vmem>>, vector<8x32xf32>
      tpu.vector_store %arg14[%c0_40, %c0_41], %74 {strides = array<i32>} : memref<8x32xf32, #tpu.memory_space<vmem>>, vector<8x32xf32>,
    } else {
    }
    %c0_i32_2 = arith.constant 0 : i32
    %5 = arith.cmpi eq, %arg3, %c0_i32_2 : i32
    %6 = arith.extui %5 : i1 to i32
    %c0_i32_3 = arith.constant 0 : i32
    %7 = arith.cmpi ne, %6, %c0_i32_3 : i32
    scf.if %7 {
      %cst_39 = arith.constant -1.000000e+30 : f32
      %74 = vector.broadcast %cst_39 : f32 to vector<8x1xf32>
      %c0_40 = arith.constant 0 : index
      %c0_41 = arith.constant 0 : index
      %75 = vector.load %arg11[%c0_40, %c0_41] : memref<8x1xf32, #tpu.memory_space<vmem>>, vector<8x1xf32>
      tpu.vector_store %arg11[%c0_40, %c0_41], %74 {strides = array<i32>} : memref<8x1xf32, #tpu.memory_space<vmem>>, vector<8x1xf32>,
      %cst_42 = arith.constant 0.000000e+00 : f32
      %76 = vector.broadcast %cst_42 : f32 to vector<8x1xf32>
      %c0_43 = arith.constant 0 : index
      %c0_44 = arith.constant 0 : index
      %77 = vector.load %arg12[%c0_43, %c0_44] : memref<8x1xf32, #tpu.memory_space<vmem>>, vector<8x1xf32>
      tpu.vector_store %arg12[%c0_43, %c0_44], %76 {strides = array<i32>} : memref<8x1xf32, #tpu.memory_space<vmem>>, vector<8x1xf32>,
      %cst_45 = arith.constant 0.000000e+00 : f32
      %78 = vector.broadcast %cst_45 : f32 to vector<8x16xf32>
      %c0_46 = arith.constant 0 : index
      %c0_47 = arith.constant 0 : index
      %79 = vector.load %arg13[%c0_46, %c0_47] : memref<8x16xf32, #tpu.memory_space<vmem>>, vector<8x16xf32>
      tpu.vector_store %arg13[%c0_46, %c0_47], %78 {strides = array<i32>} : memref<8x16xf32, #tpu.memory_space<vmem>>, vector<8x16xf32>,
    } else {
    }
    %c0 = arith.constant 0 : index
    %c0_4 = arith.constant 0 : index
    %c0_5 = arith.constant 0 : index
    %c0_6 = arith.constant 0 : index
    %8 = vector.load %arg4[%c0, %c0_4, %c0_5, %c0_6] : memref<1x1x8x16xbf16, #tpu.memory_space<vmem>>, vector<1x1x8x16xbf16>
    %9 = vector.shape_cast %8 : vector<1x1x8x16xbf16> to vector<8x16xbf16>
    %c0_7 = arith.constant 0 : index
    %c0_8 = arith.constant 0 : index
    %c0_9 = arith.constant 0 : index
    %c0_10 = arith.constant 0 : index
    %10 = vector.load %arg5[%c0_7, %c0_8, %c0_9, %c0_10] : memref<1x1x8x16xbf16, #tpu.memory_space<vmem>>, vector<1x1x8x16xbf16>
    %11 = vector.shape_cast %10 : vector<1x1x8x16xbf16> to vector<8x16xbf16>
    %c0_11 = arith.constant 0 : index
    %c0_12 = arith.constant 0 : index
    %c0_13 = arith.constant 0 : index
    %c0_14 = arith.constant 0 : index
    %12 = vector.load %arg6[%c0_11, %c0_12, %c0_13, %c0_14] : memref<1x1x8x64xbf16, #tpu.memory_space<vmem>>, vector<1x1x8x64xbf16>
    %13 = vector.shape_cast %12 : vector<1x1x8x64xbf16> to vector<8x64xbf16>
    %c0_15 = arith.constant 0 : index
    %c0_16 = arith.constant 0 : index
    %c0_17 = arith.constant 0 : index
    %c0_18 = arith.constant 0 : index
    %14 = vector.load %arg7[%c0_15, %c0_16, %c0_17, %c0_18] : memref<1x1x8x4xf32, #tpu.memory_space<vmem>>, vector<1x1x8x4xf32>
    %15 = vector.shape_cast %14 : vector<1x1x8x4xf32> to vector<8x4xf32>
    %cst = arith.constant 0.000000e+00 : f32
    %16 = vector.broadcast %cst : f32 to vector<8x16xf32>
    %17 = vector.extract_strided_slice %15 {offsets = [0, 0], sizes = [8, 1], strides = [1, 1]} : vector<8x4xf32> to vector<8x1xf32>
    %18 = vector.extract_strided_slice %13 {offsets = [0, 0], sizes = [8, 16], strides = [1, 1]} : vector<8x64xbf16> to vector<8x16xbf16>
    %19 = arith.extf %18 : vector<8x16xbf16> to vector<8x16xf32>
    %20 = vector.broadcast %17 : vector<8x1xf32> to vector<8x16xf32>
    %21 = arith.mulf %20, %19 : vector<8x16xf32>
    %22 = arith.addf %16, %21 : vector<8x16xf32>
    %23 = vector.extract_strided_slice %15 {offsets = [0, 1], sizes = [8, 1], strides = [1, 1]} : vector<8x4xf32> to vector<8x1xf32>
    %24 = vector.extract_strided_slice %13 {offsets = [0, 16], sizes = [8, 16], strides = [1, 1]} : vector<8x64xbf16> to vector<8x16xbf16>
    %25 = arith.extf %24 : vector<8x16xbf16> to vector<8x16xf32>
    %26 = vector.broadcast %23 : vector<8x1xf32> to vector<8x16xf32>
    %27 = arith.mulf %26, %25 : vector<8x16xf32>
    %28 = arith.addf %22, %27 : vector<8x16xf32>
    %29 = vector.extract_strided_slice %15 {offsets = [0, 2], sizes = [8, 1], strides = [1, 1]} : vector<8x4xf32> to vector<8x1xf32>
    %30 = vector.extract_strided_slice %13 {offsets = [0, 32], sizes = [8, 16], strides = [1, 1]} : vector<8x64xbf16> to vector<8x16xbf16>
    %31 = arith.extf %30 : vector<8x16xbf16> to vector<8x16xf32>
    %32 = vector.broadcast %29 : vector<8x1xf32> to vector<8x16xf32>
    %33 = arith.mulf %32, %31 : vector<8x16xf32>
    %34 = arith.addf %28, %33 : vector<8x16xf32>
    %35 = vector.extract_strided_slice %15 {offsets = [0, 3], sizes = [8, 1], strides = [1, 1]} : vector<8x4xf32> to vector<8x1xf32>
    %36 = vector.extract_strided_slice %13 {offsets = [0, 48], sizes = [8, 16], strides = [1, 1]} : vector<8x64xbf16> to vector<8x16xbf16>
    %37 = arith.extf %36 : vector<8x16xbf16> to vector<8x16xf32>
    %38 = vector.broadcast %35 : vector<8x1xf32> to vector<8x16xf32>
    %39 = arith.mulf %38, %37 : vector<8x16xf32>
    %40 = arith.addf %34, %39 : vector<8x16xf32>
    %cst_19 = arith.constant dense<0.000000e+00> : vector<8x8xf32>
    %41 = tpu.matmul %9, %11, %cst_19 {dimension_numbers = #tpu.dot_dimension_numbers<[1], [1], [0], [0], [0, 0, 1, 0], [], []>} : vector<8x16xbf16>, vector<8x16xbf16>, vector<8x8xf32> -> vector<8x8xf32>
    %c0_20 = arith.constant 0 : index
    %c0_21 = arith.constant 0 : index
    %42 = vector.load %arg11[%c0_20, %c0_21] : memref<8x1xf32, #tpu.memory_space<vmem>>, vector<8x1xf32>
    %cst_22 = arith.constant dense<0xFF800000> : vector<8xf32>
    %43 = vector.multi_reduction <maximumf>, %41, %cst_22 [1] : vector<8x8xf32> to vector<8xf32>
    %44 = vector.shape_cast %43 : vector<8xf32> to vector<8x1xf32>
    %45 = arith.maximumf %42, %44 : vector<8x1xf32>
    %46 = arith.subf %42, %45 : vector<8x1xf32>
    %47 = math.exp %46 : vector<8x1xf32>
    %48 = vector.broadcast %45 : vector<8x1xf32> to vector<8x8xf32>
    %49 = arith.subf %41, %48 : vector<8x8xf32>
    %50 = math.exp %49 : vector<8x8xf32>
    %c0_23 = arith.constant 0 : index
    %c0_24 = arith.constant 0 : index
    %51 = vector.load %arg12[%c0_23, %c0_24] : memref<8x1xf32, #tpu.memory_space<vmem>>, vector<8x1xf32>
    %52 = arith.mulf %47, %51 : vector<8x1xf32>
    %cst_25 = arith.constant dense<0.000000e+00> : vector<8xf32>
    %53 = vector.multi_reduction <add>, %50, %cst_25 [1] : vector<8x8xf32> to vector<8xf32>
    %54 = vector.shape_cast %53 : vector<8xf32> to vector<8x1xf32>
    %55 = arith.addf %52, %54 : vector<8x1xf32>
    %c0_26 = arith.constant 0 : index
    %c0_27 = arith.constant 0 : index
    %56 = vector.load %arg12[%c0_26, %c0_27] : memref<8x1xf32, #tpu.memory_space<vmem>>, vector<8x1xf32>
    tpu.vector_store %arg12[%c0_26, %c0_27], %55 {strides = array<i32>} : memref<8x1xf32, #tpu.memory_space<vmem>>, vector<8x1xf32>,
    %c0_28 = arith.constant 0 : index
    %c0_29 = arith.constant 0 : index
    %57 = vector.load %arg13[%c0_28, %c0_29] : memref<8x16xf32, #tpu.memory_space<vmem>>, vector<8x16xf32>
    %58 = vector.broadcast %47 : vector<8x1xf32> to vector<8x16xf32>
    %59 = arith.mulf %58, %57 : vector<8x16xf32>
    %60 = arith.truncf %50 : vector<8x8xf32> to vector<8x8xbf16>
    %61 = arith.truncf %40 : vector<8x16xf32> to vector<8x16xbf16>
    %cst_30 = arith.constant dense<0.000000e+00> : vector<8x16xf32>
    %62 = tpu.matmul %60, %61, %cst_30 {dimension_numbers = #tpu.dot_dimension_numbers<[1], [0], [0], [1], [0, 0, 1, 1], [], []>} : vector<8x8xbf16>, vector<8x16xbf16>, vector<8x16xf32> -> vector<8x16xf32>
    %63 = arith.addf %59, %62 : vector<8x16xf32>
    %c0_31 = arith.constant 0 : index
    %c0_32 = arith.constant 0 : index
    %64 = vector.load %arg13[%c0_31, %c0_32] : memref<8x16xf32, #tpu.memory_space<vmem>>, vector<8x16xf32>
    tpu.vector_store %arg13[%c0_31, %c0_32], %63 {strides = array<i32>} : memref<8x16xf32, #tpu.memory_space<vmem>>, vector<8x16xf32>,
    %c0_33 = arith.constant 0 : index
    %c0_34 = arith.constant 0 : index
    %65 = vector.load %arg11[%c0_33, %c0_34] : memref<8x1xf32, #tpu.memory_space<vmem>>, vector<8x1xf32>
    tpu.vector_store %arg11[%c0_33, %c0_34], %45 {strides = array<i32>} : memref<8x1xf32, #tpu.memory_space<vmem>>, vector<8x1xf32>,
    %c0_i32_35 = arith.constant 0 : i32
    %66 = arith.cmpi eq, %arg3, %c0_i32_35 : i32
    %67 = arith.extui %66 : i1 to i32
    %c0_i32_36 = arith.constant 0 : i32
    %68 = arith.cmpi ne, %67, %c0_i32_36 : i32
    scf.if %68 {
      %c0_39 = arith.constant 0 : index
      %c0_40 = arith.constant 0 : index
      %74 = vector.load %arg13[%c0_39, %c0_40] : memref<8x16xf32, #tpu.memory_space<vmem>>, vector<8x16xf32>
      %c0_41 = arith.constant 0 : index
      %c0_42 = arith.constant 0 : index
      %75 = vector.load %arg12[%c0_41, %c0_42] : memref<8x1xf32, #tpu.memory_space<vmem>>, vector<8x1xf32>
      %76 = tpu.reciprocal %75 {approx = true} : vector<8x1xf32> -> vector<8x1xf32>
      %77 = vector.broadcast %76 : vector<8x1xf32> to vector<8x16xf32>
      %78 = arith.mulf %74, %77 : vector<8x16xf32>
      %c0_43 = arith.constant 0 : index
      %c0_44 = arith.constant 0 : index
      %c0_45 = arith.constant 0 : index
      %c0_46 = arith.constant 0 : index
      %79 = vector.load %arg8[%c0_43, %c0_44, %c0_45, %c0_46] : memref<1x1x8x4xf32, #tpu.memory_space<vmem>>, vector<1x1x8x4xf32>
      %80 = vector.shape_cast %79 : vector<1x1x8x4xf32> to vector<8x4xf32>
      %81 = vector.extract_strided_slice %80 {offsets = [0, 0], sizes = [8, 1], strides = [1, 1]} : vector<8x4xf32> to vector<8x1xf32>
      %82 = vector.broadcast %81 : vector<8x1xf32> to vector<8x16xf32>
      %83 = arith.mulf %82, %78 : vector<8x16xf32>
      %84 = vector.extract_strided_slice %80 {offsets = [0, 1], sizes = [8, 1], strides = [1, 1]} : vector<8x4xf32> to vector<8x1xf32>
      %85 = vector.broadcast %84 : vector<8x1xf32> to vector<8x16xf32>
      %86 = arith.mulf %85, %78 : vector<8x16xf32>
      %87 = vector.extract_strided_slice %80 {offsets = [0, 2], sizes = [8, 1], strides = [1, 1]} : vector<8x4xf32> to vector<8x1xf32>
      %88 = vector.broadcast %87 : vector<8x1xf32> to vector<8x16xf32>
      %89 = arith.mulf %88, %78 : vector<8x16xf32>
      %90 = vector.extract_strided_slice %80 {offsets = [0, 3], sizes = [8, 1], strides = [1, 1]} : vector<8x4xf32> to vector<8x1xf32>
      %91 = vector.broadcast %90 : vector<8x1xf32> to vector<8x16xf32>
      %92 = arith.mulf %91, %78 : vector<8x16xf32>
      %93 = tpu.concatenate %83, %86, %89, %92 in 1 : vector<8x16xf32>, vector<8x16xf32>, vector<8x16xf32>, vector<8x16xf32> -> vector<8x64xf32>
      %94 = arith.truncf %93 : vector<8x64xf32> to vector<8x64xbf16>
      %c0_47 = arith.constant 0 : index
      %c0_48 = arith.constant 0 : index
      %95 = vector.load %arg14[%c0_47, %c0_48] : memref<8x32xf32, #tpu.memory_space<vmem>>, vector<8x32xf32>
      %c0_49 = arith.constant 0 : index
      %c0_50 = arith.constant 0 : index
      %96 = vector.load %arg9[%c0_49, %c0_50] : memref<64x32xbf16, #tpu.memory_space<vmem>>, vector<64x32xbf16>
      %cst_51 = arith.constant dense<0.000000e+00> : vector<8x32xf32>
      %97 = tpu.matmul %94, %96, %cst_51 {dimension_numbers = #tpu.dot_dimension_numbers<[1], [0], [0], [1], [0, 0, 1, 1], [], []>} : vector<8x64xbf16>, vector<64x32xbf16>, vector<8x32xf32> -> vector<8x32xf32>
      %98 = arith.addf %95, %97 : vector<8x32xf32>
      %c0_52 = arith.constant 0 : index
      %c0_53 = arith.constant 0 : index
      %99 = vector.load %arg14[%c0_52, %c0_53] : memref<8x32xf32, #tpu.memory_space<vmem>>, vector<8x32xf32>
      tpu.vector_store %arg14[%c0_52, %c0_53], %98 {strides = array<i32>} : memref<8x32xf32, #tpu.memory_space<vmem>>, vector<8x32xf32>,
    } else {
    }
    %c0_i32_37 = arith.constant 0 : i32
    %69 = arith.cmpi eq, %arg3, %c0_i32_37 : i32
    %c1_i32 = arith.constant 1 : i32
    %70 = arith.cmpi eq, %arg2, %c1_i32 : i32
    %71 = arith.andi %69, %70 : i1
    %72 = arith.extui %71 : i1 to i32
    %c0_i32_38 = arith.constant 0 : i32
    %73 = arith.cmpi ne, %72, %c0_i32_38 : i32
    scf.if %73 {
      %c0_39 = arith.constant 0 : index
      %c0_40 = arith.constant 0 : index
      %74 = vector.load %arg14[%c0_39, %c0_40] : memref<8x32xf32, #tpu.memory_space<vmem>>, vector<8x32xf32>
      %c0_41 = arith.constant 0 : index
      %c0_42 = arith.constant 0 : index
      %c0_43 = arith.constant 0 : index
      %75 = vector.load %arg10[%c0_41, %c0_42, %c0_43] : memref<1x8x32xf32, #tpu.memory_space<vmem>>, vector<1x8x32xf32>
      %76 = vector.shape_cast %75 : vector<1x8x32xf32> to vector<8x32xf32>
      %77 = vector.shape_cast %74 : vector<8x32xf32> to vector<1x8x32xf32>
      tpu.vector_store %arg10[%c0_41, %c0_42, %c0_43], %77 {strides = array<i32>} : memref<1x8x32xf32, #tpu.memory_space<vmem>>, vector<1x8x32xf32>,
    } else {
    }
    return
  }
  func.func @transform_0(%arg0: i32, %arg1: i32, %arg2: i32, %arg3: i32) -> (i32, i32, i32, i32) {
    %c0_i32 = arith.constant 0 : i32
    %c0_i32_0 = arith.constant 0 : i32
    return %arg0, %arg2, %arg1, %c0_i32 : i32, i32, i32, i32
  }
  func.func @transform_1(%arg0: i32, %arg1: i32, %arg2: i32, %arg3: i32) -> (i32, i32, i32, i32) {
    %c0_i32 = arith.constant 0 : i32
    %c0_i32_0 = arith.constant 0 : i32
    return %arg0, %arg2, %arg3, %c0_i32 : i32, i32, i32, i32
  }
  func.func @transform_2(%arg0: i32, %arg1: i32, %arg2: i32, %arg3: i32) -> (i32, i32, i32, i32) {
    %c0_i32 = arith.constant 0 : i32
    %c0_i32_0 = arith.constant 0 : i32
    return %arg0, %arg2, %arg3, %c0_i32 : i32, i32, i32, i32
  }
  func.func @transform_3(%arg0: i32, %arg1: i32, %arg2: i32, %arg3: i32) -> (i32, i32, i32, i32) {
    %c0_i32 = arith.constant 0 : i32
    %c0_i32_0 = arith.constant 0 : i32
    return %arg0, %arg2, %arg3, %c0_i32 : i32, i32, i32, i32
  }
  func.func @transform_4(%arg0: i32, %arg1: i32, %arg2: i32, %arg3: i32) -> (i32, i32, i32, i32) {
    %c0_i32 = arith.constant 0 : i32
    %c0_i32_0 = arith.constant 0 : i32
    return %arg0, %arg2, %arg1, %c0_i32 : i32, i32, i32, i32
  }
  func.func @transform_5(%arg0: i32, %arg1: i32, %arg2: i32, %arg3: i32) -> (i32, i32) {
    %c0_i32 = arith.constant 0 : i32
    %c0_i32_0 = arith.constant 0 : i32
    return %arg2, %c0_i32 : i32, i32
  }
  func.func @transform_6(%arg0: i32, %arg1: i32, %arg2: i32, %arg3: i32) -> (i32, i32, i32) {
    %c0_i32 = arith.constant 0 : i32
    %c0_i32_0 = arith.constant 0 : i32
    return %arg0, %arg1, %c0_i32 : i32, i32, i32
  }
}

</mosaic_0001>

<bundles_post_ra>
// kernel: switchhead_attention.4
= control target key start
LH: loop header
LB: loop body
LE: loop exit
PB: predicated region body
PF: predicated region fallthrough
CT: control target
= control target key end

     0   :  { %v159_v1 = vmov 0   ;;  %vm56_vm0 = vcmask 261120   ;;  %vm17_vm1 = vcmask 523264   ;;  %v160_v6 = vmov 0.0   ;;  %s197_s1 = inlined_call_operand.vmem [shape: bf16[32,192], index: 1, kind: input, shape index: {}]   ;;  %s198_s0 = inlined_call_operand.vmem [shape: bf16[16,32], index: 0, kind: input, shape index: {}]   ;;  %s199_s2 = inlined_call_operand.vmem [shape: bf16[16,192], index: 2, kind: output, shape index: {}]  }
   0x1   :  { %v152_v0 = vld [vmem:[%s197_s1 + $0x4] ss:$8 sps:$4 sm:$0xff]   ;;  %92 = vmatprep.mubr.bf16.mxu0 %v159_v1  ;;  %v154_v2 = vld [vmem:[%s197_s1] ss:$8 sps:$4 sm:$0xff]   ;;  %v155_v3 = vld [vmem:[%s197_s1 + $0x14] ss:$8 sps:$4 sm:$0xff]  }
   0x2   :  { %60 = vmatprep.subr.bf16.mxu0 %v152_v0  ;;  %v157_v4 = vld [vmem:[%s197_s1 + $0x10] ss:$8 sps:$4 sm:$0xff]   ;;  %v158_v5 = vld [vmem:[%s198_s0] sm:$0xff]   ;;  %18 = vst.msk [vmem:[#allocation2 + $0x8] sm:$0xff] %vm17_vm1, %v160_v6  ;;  %20 = vst.msk [vmem:[#allocation2 + $0x18] sm:$0xff] %vm17_vm1, %v160_v6  ;;  %vm131_vm2 = vcmask 1043456  }
   0x3   :  { %61 = vmatpush1.bf16.msra.mxu0 %v154_v2  ;;  %vm132_vm3 = vcmask 523268  }
   0x4   :  { %62 = vmatprep.subr.bf16.mxu0 %v155_v3  ;;  %vm133_vm4 = vmor %vm132_vm3, %vm131_vm2 }
   0x7   :  { %63 = vmatpush1.bf16.msra.mxu0 %v157_v4 }
   0x9   :  { %v22_v7 = vld [vmem:[#allocation2 + $0x8] sm:$0xff]  ;;  %v24_v10 = vld [vmem:[#allocation2 + $0x18] sm:$0xff] }
   0xa   :  { %145 = vmatmul.mubr.msk.bf16.vlgmr.msra.gmra.mrb[0].mxu0 %vm56_vm0, %v158_v5 }
  0xdd   :  { %v94_v8 = vpop.f32.mrb[0].mxu0 }
  0xde   :  { %v96_v9 = vpop.f32.mrb[1].mxu0 }
  0xdf   :  { %v104_v11 = vadd.f32 %v96_v9, %v22_v7  ;;  %v98_v12 = vpop.f32.mrb[2].mxu0 }
  0xe0   :  { %v100_v13 = vpop.f32.mrb[3].mxu0 }
  0xe1   :  { %109 = vst.msk [vmem:[#allocation2 + $0x8] sm:$0xff] %vm17_vm1, %v104_v11  ;;  %v106_v14 = vadd.f32 %v100_v13, %v24_v10 }
  0xe3   :  { %111 = vst.msk [vmem:[#allocation2 + $0x18] sm:$0xff] %vm17_vm1, %v106_v14 }
  0xe8   :  { %v116_v15 = vld [vmem:[#allocation2 + $0x8] sm:$0xff] }
  0xe9   :  { %v148_v16 = vpack.c.bf16 %v116_v15, %v94_v8 }
  0xea   :  { %v118_v17 = vld [vmem:[#allocation2 + $0x18] sm:$0xff] }
  0xeb   :  { %134 = vst.msk [vmem:[%s199_s2] sm:$0xff] %vm133_vm4, %v148_v16  ;;  %v149_v18 = vpack.c.bf16 %v118_v17, %v98_v12 }
  0xed   :  { %135 = vst.msk [vmem:[%s199_s2 + $0x8] sm:$0xff] %vm133_vm4, %v149_v18 }

// kernel: switchhead_attention.3
= control target key start
LH: loop header
LB: loop body
LE: loop exit
PB: predicated region body
PF: predicated region fallthrough
CT: control target
= control target key end

     0   :  { %vm26_vm0 = vcmask 261120   ;;  %vm15_vm1 = vcmask 130048   ;;  %v738_v46 = vmov 0.0   ;;  %s796_s1 = inlined_call_operand.vmem [shape: f32[32,16], index: 1, kind: input, shape index: {}]   ;;  %s797_s0 = inlined_call_operand.vmem [shape: f32[16,32], index: 0, kind: input, shape index: {}]   ;;  %s798_s2 = inlined_call_operand.vmem [shape: f32[16,16], index: 2, kind: output, shape index: {}]  }
   0x1   :  { %v22_v0 = vld [vmem:[%s796_s1] sm:$0xff]  ;;  %v23_v1 = vld [vmem:[%s796_s1 + $0x8] sm:$0xff]  ;;  %v24_v2 = vld [vmem:[%s796_s1 + $0x10] sm:$0xff]  ;;  %17 = vst.msk [vmem:[#allocation2 + $0x8] sm:$0xff] %vm15_vm1, %v738_v46 }
   0x2   :  { %v34_v3 = vand.u32 4294901760, %v22_v0  ;;  %v37_v4 = vand.u32 4294901760, %v23_v1  ;;  %v25_v5 = vld [vmem:[%s796_s1 + $0x18] sm:$0xff]  ;;  %v40_v6 = vand.u32 4294901760, %v24_v2  ;;  %v20_v7 = vld [vmem:[%s797_s0] sm:$0xff]  ;;  %v21_v8 = vld [vmem:[%s797_s0 + $0x8] sm:$0xff] }
   0x3   :  { %v43_v9 = vand.u32 4294901760, %v25_v5  ;;  %v28_v10 = vsel %vm26_vm0, %v20_v7, 0  ;;  %v31_v11 = vsel %vm26_vm0, %v21_v8, 0  ;;  %16 = vst.msk [vmem:[#allocation2] sm:$0xff] %vm15_vm1, %v738_v46 }
   0x4   :  { %v679_v12 = vpack.c.bf16 %v37_v4, %v34_v3  ;;  %v772_v13 = vand.u32 4294901760, %v28_v10  ;;  %v774_v14 = vand.u32 4294901760, %v31_v11  ;;  %v124_v15 = vsub.f32 %v22_v0, %v34_v3 }
   0x5   :  { %v683_v16 = vpack.c.bf16 %v43_v9, %v40_v6  ;;  %v131_v17 = vsub.f32 %v23_v1, %v37_v4  ;;  %v138_v18 = vsub.f32 %v24_v2, %v40_v6  ;;  %v145_v19 = vsub.f32 %v25_v5, %v43_v9 }
   0x6   :  { %680 = vmatprep.subr.bf16.mxu1 %v679_v12  ;;  %704 = vmatprep.subr.bf16.mxu0 %v679_v12  ;;  %v103_v20 = vsub.f32 %v28_v10, %v772_v13  ;;  %v113_v21 = vsub.f32 %v31_v11, %v774_v14  ;;  %v125_v22 = vand.u32 4294901760, %v124_v15 }
   0x7   :  { %682 = vmatpush3.bf16.msra.mxu1 %v679_v12  ;;  %706 = vmatpush3.bf16.msra.mxu0 %v679_v12  ;;  %v132_v23 = vand.u32 4294901760, %v131_v17  ;;  %v139_v24 = vand.u32 4294901760, %v138_v18  ;;  %v146_v25 = vand.u32 4294901760, %v145_v19  ;;  %v695_v44 = vpack.c.bf16 %v131_v17, %v124_v15 }
   0x8   :  { %684 = vmatprep.subr.bf16.mxu1 %v683_v16  ;;  %708 = vmatprep.subr.bf16.mxu0 %v683_v16  ;;  %v104_v26 = vand.u32 4294901760, %v103_v20  ;;  %v114_v27 = vand.u32 4294901760, %v113_v21  ;;  %v126_v28 = vsub.f32 %v124_v15, %v125_v22  ;;  %v699_v45 = vpack.c.bf16 %v145_v19, %v138_v18  ;;  %v19_v48 = vld [vmem:[#allocation2 + $0x8] sm:$0xff] }
   0x9   :  { %v133_v29 = vsub.f32 %v131_v17, %v132_v23  ;;  %v711_v30 = vpack.c.bf16 %v132_v23, %v125_v22  ;;  %v140_v31 = vsub.f32 %v138_v18, %v139_v24  ;;  %v147_v32 = vsub.f32 %v145_v19, %v146_v25 }
   0xa   :  { %v105_v33 = vsub.f32 %v103_v20, %v104_v26  ;;  %654 = vmatprep.mubr.f32.mxu0 %v104_v26  ;;  %v115_v34 = vsub.f32 %v113_v21, %v114_v27  ;;  %v127_v35 = vand.u32 4294901760, %v126_v28  ;;  %v715_v43 = vpack.c.bf16 %v146_v25, %v139_v24  ;;  %v18_v52 = vld [vmem:[#allocation2] sm:$0xff] }
   0xb   :  { %686 = vmatpush3.bf16.msra.mxu1 %v683_v16  ;;  %710 = vmatpush3.bf16.msra.mxu0 %v683_v16  ;;  %v134_v36 = vand.u32 4294901760, %v133_v29  ;;  %v141_v37 = vand.u32 4294901760, %v140_v31  ;;  %v148_v38 = vand.u32 4294901760, %v147_v32 }
   0xc   :  { %v106_v39 = vand.u32 4294901760, %v105_v33  ;;  %v116_v40 = vand.u32 4294901760, %v115_v34  ;;  %712 = vmatprep.subr.bf16.mxu0 %v711_v30 }
   0xd   :  { %v687_v41 = vpack.c.bf16 %v134_v36, %v127_v35  ;;  %v691_v42 = vpack.c.bf16 %v148_v38, %v141_v37 }
   0xe   :  { %621 = vmatprep.mubr.f32.mxu1 %v106_v39  ;;  %655 = vmatmul.mubr.f32.vlgmr.msra.gmra.mrb[0].mxu0 %v114_v27 }
   0xf   :  { %622 = vmatmul.mubr.f32.vlgmr.msra.gmra.mrb[0].mxu1 %v116_v40  ;;  %688 = vmatprep.subr.bf16.mxu1 %v687_v41 }
  0x10   :  { %690 = vmatpush3.bf16.msra.mxu1 %v687_v41  ;;  %714 = vmatpush3.bf16.msra.mxu0 %v711_v30 }
  0x11   :  { %692 = vmatprep.subr.bf16.mxu1 %v691_v42  ;;  %716 = vmatprep.subr.bf16.mxu0 %v715_v43 }
  0x12   :  { %632 = vmatprep.mubr.f32.mxu1 %v772_v13  ;;  %665 = vmatprep.mubr.f32.mxu0 %v772_v13 }
  0x14   :  { %694 = vmatpush3.bf16.msra.mxu1 %v691_v42  ;;  %718 = vmatpush3.bf16.msra.mxu0 %v715_v43 }
  0x15   :  { %696 = vmatprep.subr.bf16.mxu1 %v695_v44  ;;  %720 = vmatprep.subr.bf16.mxu0 %v679_v12 }
  0x17   :  { %633 = vmatmul.mubr.f32.vlgmr.msra.gmra.mrb[0].mxu1 %v774_v14  ;;  %666 = vmatmul.mubr.f32.vlgmr.msra.gmra.mrb[0].mxu0 %v774_v14 }
  0x18   :  { %698 = vmatpush3.bf16.msra.mxu1 %v695_v44  ;;  %722 = vmatpush3.bf16.msra.mxu0 %v679_v12 }
  0x19   :  { %700 = vmatprep.subr.bf16.mxu1 %v699_v45  ;;  %724 = vmatprep.subr.bf16.mxu0 %v683_v16 }
  0x1a   :  { %643 = vmatprep.mubr.f32.mxu1 %v103_v20  ;;  %676 = vmatprep.mubr.f32.mxu0 %v772_v13 }
  0x1c   :  { %702 = vmatpush3.bf16.msra.mxu1 %v699_v45  ;;  %726 = vmatpush3.bf16.msra.mxu0 %v683_v16 }
  0x1f   :  { %644 = vmatmul.mubr.f32.vlgmr.msra.gmra.mrb[0].mxu1 %v113_v21  ;;  %677 = vmatmul.mubr.f32.vlgmr.msra.gmra.mrb[0].mxu0 %v774_v14 }
  0xf2   :  { %v645_v47 = vpop.f32.mrb[0].mxu1  ;;  %v678_v49 = vpop.f32.mrb[0].mxu0 }
  0xf3   :  { %v727_v50 = vadd.f32 %v678_v49, %v645_v47  ;;  %v295_v51 = vpop.f32.mrb[1].mxu1  ;;  %v551_v53 = vpop.f32.mrb[1].mxu0 }
  0xf4   :  { %v728_v54 = vadd.f32 %v551_v53, %v295_v51 }
  0xf5   :  { %v562_v55 = vadd.f32 %v727_v50, %v19_v48 }
  0xf6   :  { %v561_v56 = vadd.f32 %v728_v54, %v18_v52 }
  0xf7   :  { %565 = vst.msk [vmem:[#allocation2 + $0x8] sm:$0xff] %vm15_vm1, %v562_v55 }
  0xf8   :  { %564 = vst.msk [vmem:[#allocation2] sm:$0xff] %vm15_vm1, %v561_v56 }
  0xfe   :  { %v570_v57 = vld [vmem:[#allocation2 + $0x8] sm:$0xff] }
  0xff   :  { %572 = vst.msk [vmem:[%s798_s2 + $0x8] sm:$0xff] %vm15_vm1, %v570_v57  ;;  %v569_v58 = vld [vmem:[#allocation2] sm:$0xff] }
 0x100   :  { %571 = vst.msk [vmem:[%s798_s2] sm:$0xff] %vm15_vm1, %v569_v58 }

// kernel: switchhead_attention.5
= control target key start
LH: loop header
LB: loop body
LE: loop exit
PB: predicated region body
PF: predicated region fallthrough
CT: control target
= control target key end

     0   :  { %s1543_s0 = inlined_call_operand.vmem [shape: bf16[2,2,8,16], index: 0, kind: input, shape index: {}]   ;;  %s1544_s1 = inlined_call_operand.vmem [shape: bf16[2,2,8,16], index: 1, kind: input, shape index: {}]   ;;  %s1545_s2 = inlined_call_operand.vmem [shape: bf16[2,2,8,64], index: 2, kind: input, shape index: {}]   ;;  %s1546_s3 = inlined_call_operand.vmem [shape: f32[2,2,8,4], index: 3, kind: input, shape index: {}]   ;;  %s1547_s4 = inlined_call_operand.vmem [shape: f32[2,2,8,4], index: 4, kind: input, shape index: {}]   ;;  %s1548_s5 = inlined_call_operand.vmem [shape: bf16[128,32], index: 5, kind: input, shape index: {}]   ;;  %s1549_s6 = inlined_call_operand.hbm [shape: f32[2,8,32], index: 6, kind: output, shape index: {}]  }
   0x1   :  { %1557 = sst [smem:[#allocation17_spill]] %s1543_s0 }
   0x2   :  { %11 = vsyncpa [#allocation7], 0 }
   0x3   :  { %13 = vsyncpa [#allocation7 + $0x1], 0  ;;  %s1334_s21 = smov 0   ;;  %s1336_s22 = smov 0  }
   0x4   :  { %s1338_s23 = smov 0   ;;  %s1340_s24 = smov 0  }
   0x5   :  { %s1342_s25 = smov 0   ;;  %s1344_s26 = smov 0  }
   0x6   :  { %s1346_s27 = smov 0   ;;  %s1348_s28 = smov 0  }
   0x7 LB: > { %1558 = sst [smem:[#allocation9_spill]] %s1254_s21  ;;  %s1016_s29 = sadd.s32 4294967295, %s1282_s28   ;;  %s1282_s28 = sphi %s1348_s28, %s19_s28   ;;  %s1278_s27 = sphi %s1346_s27, %s1577_s27   ;;  %s1274_s26 = sphi %s1344_s26, %s1576_s26   ;;  %s1270_s25 = sphi %s1342_s25, %s1575_s25   ;;  %s1266_s24 = sphi %s1340_s24, %s1574_s24   ;;  %s1262_s23 = sphi %s1338_s23, %s1573_s23   ;;  %s1258_s22 = sphi %s1336_s22, %s1579_s22   ;;  %s1254_s21 = sphi %s1334_s21, %s1578_s21  }
   0x8   : > { %1559 = sst [smem:[#allocation10_spill]] %s1262_s23  ;;  %s1017_s30 = sadd.s32 4294967294, %s1282_s28  }
   0x9   : > { %1560 = sst [smem:[#allocation11_spill]] %s1274_s26  ;;  %s37_s7 = sadd.s32 1, %s1274_s26 }
   0xa   : > { %1561 = sst [smem:[#allocation12_spill]] %s1278_s27  ;;  %p39_p0 = scmp.ge.s32.totalorder %s37_s7, 2 }
   0xb   : > { %s45_s8 = sadd.s32 1, %s1278_s27  ;;  %p240_p1 = scmp.ne.s32.totalorder %s1262_s23, %s1258_s22 }
   0xc   : > { %p241_p2 = scmp.eq.s32.totalorder %s1016_s29, 3  ;;  %s1581_s7 = smov (%p39_p0, %s37_s7), 0 }
   0xd   : > { %1562 = sst [smem:[#allocation13_spill]] %s1581_s7  ;;  %s1583_s8 = smov (!%p39_p0, %s45_s8), %s1278_s27 }
   0xe   : > { %p1383_p3 = por %p241_p2, %p240_p1  ;;  %p246_p4 = scmp.ne.s32.totalorder %s1258_s22, %s1254_s21 }
   0xf   : > { %p47_p5 = scmp.ge.s32.totalorder %s1583_s8, 2  ;;  %p247_p6 = scmp.eq.s32.totalorder %s1017_s30, 3 }
  0x10   : > { %p1020_p7 = scmp.ge.s32.totalorder %s1282_s28, 1  ;;  %p344_p8 = scmp.lt.s32.totalorder %s1282_s28, 5 }
  0x11   : > { %s1585_s8 = smov (%p47_p5, %s1583_s8), 0  ;;  %p1393_p9 = por %p247_p6, %p246_p4 }
  0x12   : > { %1564 = sst [smem:[#allocation14_spill]] %s1585_s8  ;;  %p345_p10 = pnand %p1020_p7, %p344_p8 }
  0x13   : > { %s1565_s10 = scalar_select %p1393_p9, 1, 0 }
  0x14   : > { %s225_s11 = ssub.s32 %s1278_s27, %s1585_s8  ;;  %s230_s12 = sadd.s32 1, %s1262_s23 }
  0x15   : > { %1566 = sst [smem:[#allocation15_spill]] %s1565_s10  ;;  %p228_p11 = scmp.eq.s32.totalorder %s225_s11, 0 }
  0x16   : > { %348 = sbr.rel (%p345_p10) target bundleno = 1219 (0x4c3), region = 44  ;;  %s1550_s14 = sand.u32 (!%p345_p10), 1, %s1258_s22  }
  0x17   : > { %s1401_s13 = scalar_select %p228_p11, %s1262_s23, %s230_s12  }
  0x18   : > { %p429_p12 = scmp.lt.s32.totalorder (!%p345_p10), %s1270_s25, 1  ;;  %s1407_s15 = sshll.u32 (!%p345_p10), %s1550_s14, 3 }
  0x19   : > { %1567 = sst [smem:[#allocation16_spill]] %s1401_s13  ;;  %p431_p13 = scmp.lt.s32.totalorder (!%p345_p10), %s1266_s24, 1 }
  0x1a   : > { %s1032_s16 = sshll.u32 (!%p345_p10), %s1266_s24, 3  ;;  %p491_p1 = scmp.eq.s32.totalorder (!%p345_p10), %s1266_s24, 0 }
  0x1b   : > { %p485_p0 = scmp.lt.s32.totalorder (!%p345_p10), %s1032_s16, 15  ;;  %s1568_s0 = sld [smem:[#allocation17_spill]] (!%p345_p10) }
  0x1c   : > { %s428_s8 = scalar_lea.vmem (!%p345_p10), [#allocation6], %s1407_s15 }
  0x1d   : > { %s430_s17 = scalar_select %p429_p12, %s1270_s25, 1 }
  0x1e   : > { %s432_s18 = scalar_select %p431_p13, %s1266_s24, 1 }
  0x1f   : > { %s1022_s19 = sshll.u32 %s430_s17, 1  ;;  %s1587_s16 = smov (!%p485_p0, %s1032_s16), 15  ;;  %vm497_vm0 = vcmask (%p491_p1), 261120   ;;  %v1284_v0 = vmov (%p491_p1), 0.0  }
  0x20   : > { %s437_s20 = sadd.s32 %s1022_s19, %s432_s18  ;;  %s1033_s11 = sshll.u32 %s1587_s16, 2  ;;  %498 = vst.msk [vmem:[#allocation5] sm:$0xff] (%p491_p1), %vm497_vm0, %v1284_v0 }
  0x21   : > { %s1414_s29 = sshll.u32 %s437_s20, 2  ;;  %s1029_s30 = sshll.u32 %s437_s20, 3 }
  0x22   : > { %s439_s14 = scalar_lea.vmem %s1568_s0, %s1414_s29  ;;  %s450_s27 = scalar_lea.vmem %s1544_s1, %s1414_s29 }
  0x23   : > { %s461_s17 = scalar_lea.vmem %s1545_s2, %s1414_s29  ;;  %s472_s23 = scalar_lea.vmem %s1546_s3, %s1029_s30 }
  0x24   : > { %s1434_s20 = scalar_lea.vmem %s1547_s4, %s1029_s30  ;;  %s1439_s7 = scalar_lea.vmem %s1548_s5, %s1033_s11 }
  0x25   : > { %496 = sbr.rel (!%p491_p1) target bundleno = 44 (0x2c), region = 48 }
  0x2c PF: > { %vm505_vm1 = vcmask 130048   ;;  %v508_v1 = vld [vmem:[%s450_s27] sm:$0xf]  ;;  %v1285_v2 = vmov 0.0   ;;  %vm1286_vm2 = vmmov 0   ;;  %v1287_v5 = vmov 1  }
  0x2d   : > { %1058 = vmatprep.subr.bf16.mxu0 %v1285_v2  ;;  %506 = vst.msk [vmem:[#allocation4] sm:$0xff] %vm505_vm1, %v1285_v2  ;;  %v554_v3 = vsel %vm505_vm1, %v508_v1, 0  ;;  %1060 = vmatprep.mubr.msk.bf16.mxu0 %vm1286_vm2, %v1285_v2  ;;  %v507_v4 = vld [vmem:[%s439_s14] sm:$0xf]  ;;  %v1288_v7 = vmov 2   ;;  %v1289_v8 = vmov 3  }
  0x2e   : > { %1059 = vmatpush3.bf16.xpose.msra.mxu0 %v554_v3  ;;  %1070 = vmatprep.subr.bf16.mxu1 %v1285_v2  ;;  %v510_v6 = vld [vmem:[%s472_s23] sm:$0xff]  ;;  %vm597_vm3 = vcmask 64512   ;;  %vm502_vm4 = vcmask 7168   ;;  %v1290_v14 = vmov -1e+30   ;;  %v1291_v15 = vmov 0  }
  0x2f   : > { %1064 = vmatprep.subr.bf16.mxu0 %v1285_v2  ;;  %1078 = vmatprep.mubr.msk.bf16.mxu1 %vm1286_vm2, %v1285_v2  ;;  %503 = vst.msk [vmem:[#allocation2] sm:$0xff] %vm502_vm4, %v1290_v14  ;;  %504 = vst.msk [vmem:[#allocation3] sm:$0xff] %vm502_vm4, %v1285_v2  ;;  %v509_v19 = vld [vmem:[%s461_s17] sm:$0xf]  ;;  %s1292_s23 = smov 112   ;;  %s1293_s26 = smov 96  }
  0x30   : > { %1167 = vset.pattern.permute.xlu0 %v1287_v5  ;;  %1168 = vset.pattern.permute.xlu1 %v1288_v7  ;;  %v511_v22 = vunpack.c.l.bf16 %v509_v19  ;;  %s1294_s27 = smov 80   ;;  %vm633_vm5 = vcmask 1043456   ;;  %v692_v46 = vld [vmem:[%s1434_s20] sm:$0xff]  ;;  %v1179_v54 = vld [vmem:[%s1439_s7 + $0x8] sm:$0xff]   ;;  %v1180_v63 = vld [vmem:[%s1439_s7 + $0x10] sm:$0xff]   ;;  %s1295_s10 = smov 32  }
  0x31   : > { %530 = vperm.xlu1 %1168, %v510_v6   ;;  %v1178_v53 = vld [vmem:[%s1439_s7] sm:$0xff]   ;;  %v1181_v1 = vld [vmem:[%s1439_s7 + $0x18] sm:$0xff]   ;;  %s1296_s13 = smov 16   ;;  %s1297_s14 = smov 48   ;;  %vm727_vm6 = vcmask 261120   ;;  %vm729_vm7 = vcmask 392192  }
  0x32   : > { %1071 = vmatpush3.bf16.msra.mxu1 %v1178_v53  ;;  %vm765_vm8 = vcmask 523264   ;;  %p811_p2 = scmp.eq.s32.totalorder %s1266_s24, 1  ;;  %v732_v19 = vld [vmem:[#allocation5] sm:$0xff] }
  0x33   : > { %1072 = vmatprep.subr.bf16.mxu1 %v1285_v2 }
  0x34   : > { %v621_v55 = vld [vmem:[#allocation4] sm:$0xff] }
  0x35   : > { %1061 = vmatmul.mubr.msk.bf16.vlgmr.msra.gmra.mrb[0].mxu0 %vm505_vm1, %v507_v4  ;;  %1169 = vset.pattern.permute.xlu1 %v1289_v8 }
  0x36   : > { %1066 = vmatprep.mubr.msk.bf16.mxu0 %vm1286_vm2, %v1285_v2  ;;  %540 = vperm.xlu1 %1169, %v510_v6   ;;  %v596_v16 = vld [vmem:[#allocation2] sm:$0xff]  ;;  %v613_v47 = vld [vmem:[#allocation3] sm:$0xff] }
  0x37   : > { %1073 = vmatpush3.bf16.msra.mxu1 %v1179_v54 }
  0x38   : > { %1074 = vmatprep.subr.bf16.mxu1 %v1285_v2 }
  0x3a   : > { %1170 = vset.pattern.permute.xlu1 %v1291_v15 }
  0x3b   : > { %1075 = vmatpush3.bf16.msra.mxu1 %v1180_v63 }
  0x3c   : > { %1076 = vmatprep.subr.bf16.mxu1 %v1285_v2 }
  0x3f   : > { %1077 = vmatpush3.bf16.msra.mxu1 %v1181_v1 }
  0xb0   : > { %v531_v23 = vpop.permute.xlu1 %530 }
  0xb1   : > { %v533_v26 = vmul.f32 %v531_v23, %v511_v22 }
  0xb5   : > { %v541_v27 = vpop.permute.xlu1 %540 }
  0xb6   : > { %v543_v28 = vmul.f32 %v541_v27, %v511_v22 }
 0x108   : > { %v590_v9 = vpop.f32.mrb[0].mxu0 }
 0x109   : > { %v1062_v10 = vpop.f32.mrb[1].mxu0  ;;  %v598_v11 = vsel %vm597_vm3, %v590_v9, -inf }
 0x10a   : > { %599 = vmax.xlane.f32.xlu0 %v598_v11  ;;  %v593_v12 = vpop.f32.mrb[2].mxu0 }
 0x10b   : > { %v1063_v13 = vpop.f32.mrb[3].mxu0 }
 0x120   : > { %520 = vperm.xlu0 %1167, %v510_v6  }
 0x124   : > { %1171 = vset.pattern.permute.xlu0 %v1291_v15 }
 0x197   : > { %v600_v17 = vpop.xlane.xlu0 %599 }
 0x198   : > { %v601_v18 = vmax.f32 %v596_v16, %v600_v17 }
 0x19a   : > { %v602_v20 = vsub.f32 %v596_v16, %v601_v18  ;;  %679 = vst.msk [vmem:[#allocation2] sm:$0xff] %vm502_vm4, %v601_v18  ;;  %607 = vperm.xlu1 %1170, %v601_v18  }
 0x19c   : > { %v603_v21 = vmul.f32 1.442695, %v602_v20 }
 0x19e   : > { %1182 = vpow2.f32 %v603_v21  ;;  %514 = vperm.xlu1 %1170, %v510_v6  }
 0x19f   : > { %v521_v24 = vpop.permute.xlu0 %520 }
 0x1a0   : > { %v523_v25 = vmul.f32 %v521_v24, %v511_v22 }
 0x1a2   : > { %525 = vrot.lane.b32.xlu1 %v523_v25, %s1292_s23 }
 0x1a3   : > { %1173 = vset.pattern.permute.xlu1 %v1288_v7 }
 0x1a6   : > { %535 = vrot.lane.b32.xlu1 %v533_v26, %s1293_s26 }
 0x1a8   : > { %v1183_v29 = vpop.eup %1182 }
 0x1a9   : > { %624 = vperm.xlu0 %1171, %v1183_v29   ;;  %v614_v48 = vmul.f32 %v1183_v29, %v613_v47 }
 0x1aa   : > { %545 = vrot.lane.b32.xlu1 %v543_v28, %s1294_s27 }
 0x1ad   : > { %1172 = vset.pattern.permute.xlu0 %v1287_v5 }
 0x1ae   : > { %700 = vperm.xlu0 %1172, %v692_v46  }
 0x1b2   : > { %1174 = vset.pattern.permute.xlu0 %v1291_v15 }
 0x219   : > { %v608_v30 = vpop.permute.xlu1 %607 }
 0x21a   : > { %v610_v31 = vsub.f32 %v590_v9, %v608_v30 }
 0x21c   : > { %v611_v32 = vmul.f32 1.442695, %v610_v31 }
 0x21d   : > { %v515_v33 = vpop.permute.xlu1 %514 }
 0x21e   : > { %1184 = vpow2.f32 %v611_v32  ;;  %v517_v35 = vmul.f32 %v515_v33, %v511_v22 }
 0x221   : > { %v526_v34 = vpop.permute.xlu1 %525 }
 0x222   : > { %v528_v37 = vadd.f32 %v526_v34, %v517_v35 }
 0x225   : > { %v536_v36 = vpop.permute.xlu1 %535 }
 0x226   : > { %v538_v39 = vadd.f32 %v536_v36, %v528_v37 }
 0x228   : > { %v1185_v38 = vpop.eup %1184  ;;  %v625_v56 = vpop.permute.xlu0 %624 }
 0x229   : > { %v546_v40 = vpop.permute.xlu1 %545  ;;  %v615_v41 = vsel %vm597_vm3, %v1185_v38, 0.0  ;;  %v628_v45 = vpack.c.bf16 %v1185_v38, %v1185_v38  ;;  %v627_v57 = vmul.f32 %v625_v56, %v621_v55 }
 0x22a   : > { %v548_v42 = vadd.f32 %v546_v40, %v538_v39  ;;  %616 = vadd.xlane.f32.xlu1 %v615_v41 }
 0x22c   : > { %v629_v43 = vpack.c.bf16 %v548_v42, %v548_v42 }
 0x22d   : > { %v701_v0 = vpop.permute.xlu0 %700 }
 0x22e   : > { %v635_v44 = vsel %vm633_vm5, %v629_v43, 0 }
 0x22f   : > { %1065 = vmatpush3.bf16.msra.mxu0 %v635_v44 }
 0x232   : > { %1067 = vmatmul.mubr.msk.bf16.vlgmr.msra.gmra.mrb[4].mxu0 %vm597_vm3, %v628_v45 }
 0x23b   : > { %705 = vperm.xlu1 %1173, %v692_v46  }
 0x2b7   : > { %v617_v49 = vpop.xlane.xlu1 %616 }
 0x2b8   : > { %v618_v50 = vadd.f32 %v617_v49, %v614_v48 }
 0x2ba   : > { %620 = vst.msk [vmem:[#allocation3] sm:$0xff] %vm502_vm4, %v618_v50 }
 0x2bb   : > { %v706_v5 = vpop.permute.xlu1 %705 }
 0x2c1   : > { %v684_v51 = vld [vmem:[#allocation3] sm:$0xff] }
 0x2c2   : > { %1186 = vrcp.f32 %v684_v51 }
 0x2cc   : > { %v1187_v52 = vpop.eup %1186 }
 0x2cd   : > { %688 = vperm.xlu0 %1174, %v1187_v52  }
 0x2d1   : > { %1175 = vset.pattern.permute.xlu0 %v1289_v8 }
 0x2d2   : > { %710 = vperm.xlu0 %1175, %v692_v46  }
 0x2d6   : > { %1176 = vset.pattern.permute.xlu0 %v1291_v15 }
 0x2d7   : > { %695 = vperm.xlu0 %1176, %v692_v46  }
 0x2db   : > { %1177 = vset.pattern.permute.xlu0 %v1289_v8 }
 0x305   : > { %v671_v58 = vpop.f32.mrb[4].mxu0 }
 0x306   : > { %v677_v59 = vadd.f32 %v671_v58, %v627_v57  ;;  %v1068_v60 = vpop.f32.mrb[5].mxu0 }
 0x307   : > { %v674_v61 = vpop.f32.mrb[6].mxu0 }
 0x308   : > { %678 = vst.msk [vmem:[#allocation4] sm:$0xff] %vm505_vm1, %v677_v59  ;;  %v1069_v62 = vpop.f32.mrb[7].mxu0 }
 0x30f   : > { %v683_v3 = vld [vmem:[#allocation4] sm:$0xff] }
 0x34c   : > { %v689_v4 = vpop.permute.xlu0 %688 }
 0x34d   : > { %v691_v6 = vmul.f32 %v689_v4, %v683_v3 }
 0x34f   : > { %v708_v7 = vmul.f32 %v706_v5, %v691_v6  ;;  %v703_v8 = vmul.f32 %v701_v0, %v691_v6 }
 0x351   : > { %719 = vrot.lane.b32.xlu0 %v708_v7, %s1295_s10  ;;  %715 = vrot.lane.b32.xlu1 %v703_v8, %s1296_s13  ;;  %v711_v9 = vpop.permute.xlu0 %710 }
 0x352   : > { %v713_v10 = vmul.f32 %v711_v9, %v691_v6 }
 0x355   : > { %723 = vrot.lane.b32.xlu1 %v713_v10, %s1297_s14 }
 0x356   : > { %v696_v11 = vpop.permute.xlu0 %695 }
 0x357   : > { %v698_v2 = vmul.f32 %v696_v11, %v691_v6 }
 0x3c3   : > { %v716_v12 = vpop.permute.xlu1 %715  ;;  %v720_v14 = vpop.permute.xlu0 %719 }
 0x3c4   : > { %v726_v13 = vsel %vm505_vm1, %v698_v2, %v716_v12 }
 0x3c5   : > { %v728_v15 = vsel %vm727_vm6, %v726_v13, %v720_v14 }
 0x3c7   : > { %v724_v16 = vpop.permute.xlu1 %723 }
 0x3c8   : > { %v730_v17 = vsel %vm729_vm7, %v728_v15, %v724_v16 }
 0x3c9   : > { %v731_v18 = vpack.c.bf16 %v730_v17, %v730_v17 }
 0x3cb   : > { %1079 = vmatmul.mubr.msk.bf16.vlgmr.msra.gmra.mrb[0].mxu1 %vm765_vm8, %v731_v18 }
 0x49b   : > { %815 = sbr.rel (!%p811_p2) target bundleno = 1194 (0x4aa), region = 60 }
 0x49e   : > { %v803_v20 = vpop.f32.mrb[0].mxu1 }
 0x49f   : > { %v809_v21 = vadd.f32 %v803_v20, %v732_v19  ;;  %v1080_v22 = vpop.f32.mrb[1].mxu1 }
 0x4a0   : > { %v806_v23 = vpop.f32.mrb[2].mxu1 }
 0x4a1   : > { %810 = vst.msk [vmem:[#allocation5] sm:$0xff] %vm727_vm6, %v809_v21  ;;  %v1081_v24 = vpop.f32.mrb[3].mxu1 }
 0x4a8   : > { %v816_v25 = vld [vmem:[#allocation5] sm:$0xff] }
 0x4a9   : > { %818 = vst.msk [vmem:[%s428_s8] sm:$0xff] %vm727_vm6, %v816_v25 }
 0x4aa PF: > { %s1044_s24 = sshll.u32 %s1270_s25, 7  ;;  %s834_s17 = sshll.u32 %s428_s8, 4  ;;  %s835_s17 = int_to_ptr.vmem [resolvable:$true] %s834_s17 }
 0x4ab   : > { %s1492_s30 = scalar_lea.hbm %s1549_s6, %s1044_s24  ;;  %s1569_s18 = sand.u32 1, %s1258_s22  }
 0x4ac   : > { %s820_s19 = scalar_lea.sflag [#allocation7], %s1569_s18  ;;  %s1188_s20 = scalar_lea.vmem %s835_s17, 128 }
 0x4ad   : > { %p1189_p4 = scmp.ne.s32.totalorder %s835_s17, %s1188_s20  ;;  %s1298_s11 = smov [#allocation6]  }
 0x4ae   : > { %s1192_s12 = sshll.u32 %s1298_s11, 4  ;;  %s1193_s12 = int_to_ptr.vmem [resolvable:$false] %s1192_s12 }
 0x4af   : > { %p1190_p5 = pnand %p1189_p4, %p1383_p3  ;;  %s1194_s7 = scalar_lea.vmem %s1193_s12, 256 }
 0x4b0   : > { %p1195_p7 = scmp.lt.s32.totalorder %s835_s17, %s1193_s12  ;;  %p1196_p8 = scmp.lt.s32.totalorder %s1194_s7, %s1188_s20 }
 0x4b1   : > { %p1191_p6 = pneg %p1190_p5 }
 0x4b2   : > { %p1197_p10 = por %p1196_p8, %p1195_p7 }
 0x4b4   : > { %p1198_p11 = pnand %p1197_p10, %p1191_p6 }
 0x4b6   : > { %1201 = shalt.err (!%p1198_p11)
}
 0x4b7   : > { %s1202_s25 = scalar_lea.hbm %s1492_s30, 128  ;;  %s1206_s0 = scalar_lea.hbm %s1549_s6, 256 }
 0x4b8   : > { %p1203_p12 = scmp.ne.s32.totalorder %s1492_s30, %s1202_s25  ;;  %p1207_p1 = scmp.lt.u32.totalorder %s1492_s30, %s1549_s6 }
 0x4b9   : > { %p1208_p2 = scmp.lt.u32.totalorder %s1206_s0, %s1202_s25  ;;  %p1210_p5 = scmp.lt.u32.totalorder %s1202_s25, %s1492_s30 }
 0x4ba   : > { %p1204_p13 = pnand %p1203_p12, %p1383_p3 }
 0x4bb   : > { %p1209_p4 = por %p1208_p2, %p1207_p1 }
 0x4bc   : > { %p1205_p0 = pneg %p1204_p13 }
 0x4bd   : > { %p1211_p6 = por %p1210_p5, %p1209_p4 }
 0x4bf   : > { %p1212_p7 = pnand %p1211_p6, %p1205_p0 }
 0x4c1   : > { %1215 = shalt.err (!%p1212_p7)
}
 0x4c2   : > { %1082 = dma.vmem_to_hbm [thread:$0]  (%p1383_p3), %s835_s17, 128, %s1492_s30, %s820_s19  }
 0x4c3 PF: > { %s1570_s26 = sld [smem:[#allocation9_spill]]  ;;  %p1088_p8 = scmp.ge.s32.totalorder %s1282_s28, 2 }
 0x4c5   : > { %p1085_p10 = pnand %p1088_p8, %p1393_p9 }
 0x4c9   : > { %s846_s10 = sand.u32 1, %s1570_s26  }
 0x4ca   : > { %s847_s13 = scalar_lea.sflag [#allocation7], %s846_s10 }
 0x4cb   : > { %1249 = dma.done.wait (!%p1085_p10), %s847_s13, 128  }
 0x4cc   : > { %1251 = vsyncadd (!%p1085_p10), %s847_s13, 4294967168  ;;  %s19_s28 = sadd.s32 1, %s1282_s28   ;;  %s1572_s14 = sld [smem:[#allocation10_spill]] }
 0x4cd   : > { %p16_p11 = scmp.ge.s32.totalorder %s19_s28, 6   ;;  %s1573_s23 = sld [smem:[#allocation16_spill]] }
 0x4ce   : > { %s1574_s24 = sld [smem:[#allocation11_spill]]  ;;  %s1575_s25 = sld [smem:[#allocation12_spill]] }
 0x4cf   : > { %s1576_s26 = sld [smem:[#allocation13_spill]]  ;;  %s1577_s27 = sld [smem:[#allocation14_spill]] }
 0x4d0   : > { %s1578_s21 = smov %s1258_s22  ;;  %18 = sbr.rel (!%p16_p11) target bundleno = 7 (0x7), region = 110 }
 0x4d2   : > { %s1579_s22 = smov %s1572_s14 }
 0x4d7   :  { %852 = vsyncpa [#allocation7], 1 }
 0x4d8   :  { %854 = vsyncpa [#allocation7 + $0x1], 1 }

</bundles_post_ra>
